<compile_context>
chip_gen: v7x
topology: tpu7x:2x2x1
jax: 0.10.0
libtpu: 0.0.40
codegen_flags: <defaults>
</compile_context>

<pallas_src>
import functools

import jax
import jax.numpy as jnp
from jax import lax
from jax.experimental import pallas as pl
from jax.experimental.pallas import tpu as pltpu


def _seqpool_kernel(x_ref, w_ref, o_ref, *, chunk_rows: int):
    # x_ref: (TB, S, D) block of input rows (input dtype)
    # w_ref: (1, D)     resident lane-dense weight
    # o_ref: (TB, D)    output block
    tb = o_ref.shape[0]
    w = w_ref[...].astype(jnp.float32)                       # (1, D)

    def process(start, rows):
        xs = x_ref[pl.ds(start, rows)]                       # (rows, S, D), input dtype
        # Attention scores: VPU multiply + lane reduce (no width-1 MXU matmul).
        scores = jnp.sum(xs * w[None], axis=-1)              # (rows, S), f32
        # Numerically-stable softmax over the sequence axis (bias dropped:
        # softmax is shift-invariant per row).
        m = jnp.max(scores, axis=1, keepdims=True)           # (rows, 1)
        e = jnp.exp(scores - m)                               # (rows, S)
        denom = jnp.sum(e, axis=1, keepdims=True)             # (rows, 1)
        r = pl.reciprocal(denom, approx=True)                 # EUP slot
        r = r * (2.0 - denom * r)                             # Newton step -> f32 precision
        # Weighted token average (f32 accumulation); normalize the pooled
        # result (D mults/row) instead of the attention weights (S mults/row).
        pooled = jnp.sum(e[:, :, None] * xs, axis=1) * r      # (rows, D), f32
        o_ref[pl.ds(start, rows), :] = pooled.astype(o_ref.dtype)

    n_full = tb // chunk_rows
    rem = tb % chunk_rows

    if n_full > 0:
        def body(c, carry):
            process(pl.multiple_of(c * chunk_rows, chunk_rows), chunk_rows)
            return carry
        lax.fori_loop(0, n_full, body, 0)
    if rem > 0:
        # Static tail (only hit when the whole block is smaller than one
        # chunk, i.e. tiny N); start/size are Python ints.
        process(n_full * chunk_rows, rem)


def sequence_pooling(x: jax.Array, weight: jax.Array, bias: jax.Array | None = None,
                     *, block_rows: int | None = None,
                     chunk_rows: int | None = None) -> jax.Array:
    """x: (N, S, D), weight: (D, 1)/(1, D)/(D,), bias: (1,) [unused] -> (N, D)."""
    del bias  # softmax over S is shift-invariant -> scalar bias is a no-op
    N, S, D = x.shape
    w2d = jnp.asarray(weight).reshape(1, D)                  # lane-dense weight vector

    itemsize = jnp.dtype(x.dtype).itemsize
    sub = {4: 8, 2: 16, 1: 32}.get(itemsize, 8)              # sublane tile of I/O dtype
    row_bytes = S * D * itemsize
    f32_row_bytes = S * D * 4

    # Rows per in-kernel chunk: ~2 MiB of f32 temporaries, sublane-aligned so
    # the (rows, D) output stores stay dense, unmasked vst.
    if chunk_rows is None:
        ch = max(sub, ((2 << 20) // max(f32_row_bytes, 1)) // sub * sub)
    else:
        ch = max(1, int(chunk_rows))                         # should be a multiple of `sub`

    # Rows per grid step: ~8 MiB of x (double-buffered ~16 MiB), a whole
    # number of chunks; fits the 48 MiB VMEM limit on v5e/v6e/v7x while
    # amortizing per-step pipeline overhead.
    if block_rows is None:
        block_rows = (8 << 20) // max(row_bytes, 1)
    block_rows = max(ch, int(block_rows))

    tb = min(block_rows, N)
    if tb >= ch:
        tb = (tb // ch) * ch                                  # whole chunks -> aligned stores
    if tb >= N and N > ch:
        # Everything would fit one step: split so v7x's 2 TensorCores both
        # get work (batch grid axis is "parallel").
        tb = pl.cdiv(pl.cdiv(N, ch), 2) * ch

    grid = (pl.cdiv(N, tb),)   # ragged last block handled by Pallas (no host pad)
    # NOTE: D not a multiple of 128 still compiles but degrades to partially
    # masked lane ops; pick d_model as a multiple of 128 where possible.

    return pl.pallas_call(
        functools.partial(_seqpool_kernel, chunk_rows=ch),
        out_shape=jax.ShapeDtypeStruct((N, D), x.dtype),
        grid_spec=pltpu.PrefetchScalarGridSpec(
            num_scalar_prefetch=0,
            grid=grid,
            in_specs=[
                pl.BlockSpec((tb, S, D), lambda i: (i, 0, 0)),   # TB rows per step
                pl.BlockSpec((1, D), lambda i: (0, 0)),          # resident weight
            ],
            out_specs=pl.BlockSpec((tb, D), lambda i: (i, 0)),
        ),
        compiler_params=pltpu.CompilerParams(
            dimension_semantics=("parallel",),   # batch axis shards across TCs on v7x
            vmem_limit_bytes=48 << 20,           # safe headroom on all generations
        ),
    )(x, w2d)


def _reference(x, weight, bias):
    scores = jnp.einsum("nsd,do->nso", x, jnp.asarray(weight).reshape(-1, 1)) + bias
    attn = jax.nn.softmax(scores, axis=1)                     # (N, S, 1)
    return jnp.einsum("nso,nsd->nd", attn, x)                 # (N, D)


if __name__ == "__main__":
    key = jax.random.PRNGKey(0)
    kx, kw, kb = jax.random.split(key, 3)

    # Small shapes consistent with the module: (N, S, d_model).
    N, S, D = 2, 8, 32
    x = jax.random.normal(kx, (N, S, D), dtype=jnp.float32)
    # Deterministic "Linear(d_model, 1)" params (synthetic, not a checkpoint).
    bound = 1.0 / (D ** 0.5)
    weight = jax.random.uniform(kw, (D, 1), minval=-bound, maxval=bound, dtype=jnp.float32)
    bias = jax.random.uniform(kb, (1,), minval=-bound, maxval=bound, dtype=jnp.float32)

    out = jax.block_until_ready(sequence_pooling(x, weight, bias))
    ref = _reference(x, weight, bias)
    assert out.shape == (N, D), out.shape
    assert jnp.allclose(out, ref, atol=1e-5, rtol=1e-5), float(jnp.max(jnp.abs(out - ref)))

    # Second config: exercises the multi-step grid, the ragged last block
    # (no host-side padding), and the in-kernel chunk loop.
    N2 = 20
    x2 = jax.random.normal(kx, (N2, S, D), dtype=jnp.float32)
    out2 = jax.block_until_ready(
        sequence_pooling(x2, weight, bias, block_rows=16, chunk_rows=8))
    ref2 = _reference(x2, weight, bias)
    assert out2.shape == (N2, D), out2.shape
    assert jnp.allclose(out2, ref2, atol=1e-5, rtol=1e-5), float(jnp.max(jnp.abs(out2 - ref2)))

    print("KERNEL_OK")
</pallas_src>

<mosaic_0001>
module attributes {stable_mosaic.version = 11 : i64} {
  func.func @_seqpool_kernel(%arg0: i32, %arg1: memref<2x8x32xf32, #tpu.memory_space<vmem>>, %arg2: memref<1x32xf32, #tpu.memory_space<vmem>>, %arg3: memref<2x32xf32, #tpu.memory_space<vmem>>) attributes {dimension_semantics = [#tpu.dimension_semantics<parallel>], iteration_bounds = array<i64: 1>, scalar_prefetch = 0 : i64, scratch_operands = 0 : i64, tpu.core_type = #tpu.core_type<tc>, window_params = [{transform_indices = @transform_0, window_bounds = array<i64: 2, 8, 32>}, {pipeline_mode = #tpu.pipeline_mode<synchronous>, transform_indices = @transform_1, window_bounds = array<i64: 1, 32>}, {transform_indices = @transform_2, window_bounds = array<i64: 2, 32>}]} {
    %c0 = arith.constant 0 : index
    %c0_0 = arith.constant 0 : index
    %0 = vector.load %arg2[%c0, %c0_0] : memref<1x32xf32, #tpu.memory_space<vmem>>, vector<1x32xf32>
    %c0_1 = arith.constant 0 : index
    %c0_2 = arith.constant 0 : index
    %c0_3 = arith.constant 0 : index
    %1 = vector.load %arg1[%c0_1, %c0_2, %c0_3] : memref<2x8x32xf32, #tpu.memory_space<vmem>>, vector<2x8x32xf32>
    %2 = vector.shape_cast %0 : vector<1x32xf32> to vector<1x1x32xf32>
    %3 = vector.broadcast %2 : vector<1x1x32xf32> to vector<2x8x32xf32>
    %4 = arith.mulf %1, %3 : vector<2x8x32xf32>
    %cst = arith.constant dense<0.000000e+00> : vector<2x8xf32>
    %5 = vector.multi_reduction <add>, %4, %cst [2] : vector<2x8x32xf32> to vector<2x8xf32>
    %cst_4 = arith.constant dense<0xFF800000> : vector<2xf32>
    %6 = vector.multi_reduction <maximumf>, %5, %cst_4 [1] : vector<2x8xf32> to vector<2xf32>
    %7 = vector.shape_cast %6 : vector<2xf32> to vector<2x1xf32>
    %8 = vector.broadcast %7 : vector<2x1xf32> to vector<2x8xf32>
    %9 = arith.subf %5, %8 : vector<2x8xf32>
    %10 = math.exp %9 : vector<2x8xf32>
    %cst_5 = arith.constant dense<0.000000e+00> : vector<2xf32>
    %11 = vector.multi_reduction <add>, %10, %cst_5 [1] : vector<2x8xf32> to vector<2xf32>
    %12 = vector.shape_cast %11 : vector<2xf32> to vector<2x1xf32>
    %13 = tpu.reciprocal %12 {approx = true} : vector<2x1xf32> -> vector<2x1xf32>
    %14 = arith.mulf %12, %13 : vector<2x1xf32>
    %cst_6 = arith.constant 2.000000e+00 : f32
    %15 = vector.broadcast %cst_6 : f32 to vector<2x1xf32>
    %16 = arith.subf %15, %14 : vector<2x1xf32>
    %17 = arith.mulf %13, %16 : vector<2x1xf32>
    %18 = vector.shape_cast %10 : vector<2x8xf32> to vector<2x8x1xf32>
    %19 = vector.broadcast %18 : vector<2x8x1xf32> to vector<2x8x32xf32>
    %20 = arith.mulf %19, %1 : vector<2x8x32xf32>
    %cst_7 = arith.constant dense<0.000000e+00> : vector<2x32xf32>
    %21 = vector.multi_reduction <add>, %20, %cst_7 [1] : vector<2x8x32xf32> to vector<2x32xf32>
    %22 = vector.broadcast %17 : vector<2x1xf32> to vector<2x32xf32>
    %23 = arith.mulf %21, %22 : vector<2x32xf32>
    %c0_8 = arith.constant 0 : index
    %c0_9 = arith.constant 0 : index
    %24 = vector.load %arg3[%c0_8, %c0_9] : memref<2x32xf32, #tpu.memory_space<vmem>>, vector<2x32xf32>
    tpu.vector_store %arg3[%c0_8, %c0_9], %23 {strides = array<i32>} : memref<2x32xf32, #tpu.memory_space<vmem>>, vector<2x32xf32>,
    return
  }
  func.func @transform_0(%arg0: i32) -> (i32, i32, i32) {
    %c0_i32 = arith.constant 0 : i32
    %c0_i32_0 = arith.constant 0 : i32
    %c0_i32_1 = arith.constant 0 : i32
    return %arg0, %c0_i32, %c0_i32_0 : i32, i32, i32
  }
  func.func @transform_1(%arg0: i32) -> (i32, i32) {
    %c0_i32 = arith.constant 0 : i32
    %c0_i32_0 = arith.constant 0 : i32
    %c0_i32_1 = arith.constant 0 : i32
    return %c0_i32, %c0_i32_0 : i32, i32
  }
  func.func @transform_2(%arg0: i32) -> (i32, i32) {
    %c0_i32 = arith.constant 0 : i32
    %c0_i32_0 = arith.constant 0 : i32
    return %arg0, %c0_i32 : i32, i32
  }
}

</mosaic_0001>

<bundles_post_ra>
// kernel: tpu_custom_call.1
= control target key start
LH: loop header
LB: loop body
LE: loop exit
PB: predicated region body
PF: predicated region fallthrough
CT: control target
= control target key end

     0   :  { %7 = vsyncpa [#allocation3], 0  ;;  %s269_s0 = inlined_call_operand.hbm [shape: f32[2,8,32], index: 0, kind: input, shape index: {}]   ;;  %s270_s1 = inlined_call_operand.vmem [shape: f32[1,32], index: 1, kind: input, shape index: {}]   ;;  %s271_s2 = inlined_call_operand.hbm [shape: f32[2,32], index: 2, kind: output, shape index: {}]  }
   0x1   :  { %8 = vsyncpa [#allocation4], 0  ;;  %s213_s9 = smov [#allocation2]   ;;  %s165_s13 = scalar_lea.hbm %s269_s0, 256 }
   0x2   :  { %s14_s10 = sshll.u32 %s213_s9, 4  ;;  %p166_p0 = scmp.ne.s32.totalorder %s269_s0, %s165_s13  ;;  %s15_s10 = int_to_ptr.vmem [resolvable:$true] %s14_s10 }
   0x3   :  { %p169_p1 = scmp.lt.u32.totalorder %s165_s13, %s269_s0 }
   0x5   :  { %p171_p2 = pnand %p169_p1, %p166_p0 }
   0x7   :  { %174 = shalt.err (!%p171_p2)
}
   0x8   :  { %s175_s18 = scalar_lea.vmem %s15_s10, 256  ;;  %p180_p4 = scmp.lt.s32.totalorder %s15_s10, %s15_s10 }
   0x9   :  { %p176_p3 = scmp.ne.s32.totalorder %s15_s10, %s175_s18  ;;  %p181_p5 = scmp.lt.s32.totalorder %s175_s18, %s175_s18 }
   0xb   :  { %p182_p6 = por %p181_p5, %p180_p4 }
   0xd   :  { %p183_p7 = pnand %p182_p6, %p176_p3 }
   0xf   :  { %186 = shalt.err (!%p183_p7)
}
  0x10   :  { %s214_s19 = smov 128   ;;  %s215_s20 = smov 8  }
  0x11   :  { %20 = dma.hbm_to_vmem [thread:$0]  %s269_s0, 256, %s15_s10, [#allocation3], %s214_s19, %s214_s19, %s215_s20  }
  0x12   :  { %209 = dma.done.wait [#allocation3], 256  }
  0x13   :  { %210 = vsyncadd [#allocation3], 4294967040  ;;  %v151_v0 = vld [vmem:[%s270_s1] ss:$0 sm:$0xff]  ;;  %vm37_vm0 = vcmask 261120   ;;  %v28_v2 = vld [vmem:[#allocation2 + $0x8] sm:$0xff]  ;;  %v46_v7 = vlaneseq }
  0x14   :  { %v27_v1 = vld [vmem:[#allocation2] sm:$0xff]  ;;  %v36_v4 = vmul.f32 %v151_v0, %v28_v2  ;;  %vm56_vm1 = vcmask 1041409   ;;  %vm59_vm2 = vcmask 58368   ;;  %v216_v17 = vmov 0   ;;  %s217_s0 = smov [#allocation5]  }
  0x15   :  { %v35_v3 = vmul.f32 %v151_v0, %v27_v1  ;;  %v47_v8 = vand.u32 127, %v46_v7  ;;  %v49_v9 = vshrl.u32 %v46_v7, 7  ;;  %158 = vset.pattern.permute.xlu0 %v216_v17  ;;  %157 = vset.pattern.permute.xlu1 %v216_v17  ;;  %s142_s1 = sshll.u32 %s217_s0, 4  ;;  %vm134_vm3 = vcmask 254976   ;;  %s143_s1 = int_to_ptr.vmem [resolvable:$true] %s142_s1 }
  0x16   :  { %v41_v6 = vsel %vm37_vm0, %v36_v4, 0.0  ;;  %s187_s25 = scalar_lea.vmem %s143_s1, 32  ;;  %p192_p9 = scmp.lt.s32.totalorder %s143_s1, %s143_s1 }
  0x17   :  { %v38_v5 = vsel %vm37_vm0, %v35_v3, 0.0  ;;  %v50_v11 = vsub.s32 %v47_v8, %v49_v9  ;;  %v66_v18 = vsub.s32 0, %v49_v9  ;;  %v70_v19 = vsub.s32 1, %v49_v9  ;;  %p188_p8 = scmp.ne.s32.totalorder %s143_s1, %s187_s25  ;;  %p193_p10 = scmp.lt.s32.totalorder %s187_s25, %s187_s25 }
  0x18   :  { %39 = vadd.xlane.f32.xlu0 %v38_v5 }
  0x19   :  { %p194_p11 = por %p193_p10, %p192_p9 }
  0x1b   :  { %p195_p12 = pnand %p194_p11, %p188_p8 }
  0x1c   :  { %42 = vadd.xlane.f32.xlu0 %v41_v6 }
  0xa5   :  { %v40_v10 = vpop.xlane.xlu0 %39 }
  0xa6   :  { %v51_v13 = vrot.slane %v40_v10, %v50_v11 }
  0xa9   :  { %v43_v12 = vpop.xlane.xlu0 %42 }
  0xaa   :  { %v55_v14 = vrot.slane %v43_v12, %v50_v11 }
  0xac   :  { %v57_v15 = vsel %vm56_vm1, %v55_v14, %v51_v13 }
  0xad   :  { %v60_v16 = vsel %vm59_vm2, %v57_v15, -inf }
  0xae   :  { %61 = vmax.xlane.f32.xlu1 %v60_v16 }
 0x13b   :  { %v62_v20 = vpop.xlane.xlu1 %61 }
 0x13c   :  { %v67_v21 = vrot.slane %v62_v20, %v66_v18  ;;  %v71_v22 = vrot.slane %v62_v20, %v70_v19 }
 0x13e   :  { %v74_v23 = vsub.f32 %v40_v10, %v67_v21  ;;  %v75_v24 = vsub.f32 %v43_v12, %v71_v22 }
 0x140   :  { %v76_v25 = vmul.f32 1.442695, %v74_v23  ;;  %v78_v26 = vmul.f32 1.442695, %v75_v24 }
 0x142   :  { %159 = vpow2.f32 %v76_v25 }
 0x143   :  { %161 = vpow2.f32 %v78_v26 }
 0x14c   :  { %v160_v27 = vpop.eup %159 }
 0x14d   :  { %v162_v28 = vpop.eup %161  ;;  %83 = vperm.xlu1 %157, %v160_v27  }
 0x14e   :  { %86 = vperm.xlu0 %158, %v162_v28  }
 0x1cc   :  { %v84_v29 = vpop.permute.xlu1 %83 }
 0x1cd   :  { %v87_v30 = vpop.permute.xlu0 %86  ;;  %v91_v31 = vrot.slane %v84_v29, %v50_v11  ;;  %v107_v36 = vmul.f32 %v84_v29, %v27_v1 }
 0x1ce   :  { %v95_v32 = vrot.slane %v87_v30, %v50_v11  ;;  %v108_v35 = vmul.f32 %v87_v30, %v28_v2 }
 0x1cf   :  { %v109_v38 = vsel %vm37_vm0, %v107_v36, 0.0 }
 0x1d0   :  { %v96_v33 = vsel %vm56_vm1, %v95_v32, %v91_v31  ;;  %v116_v37 = vsel %vm37_vm0, %v108_v35, 0.0  ;;  %v110_v40 = vrot.slane %v109_v38, 4 }
 0x1d1   :  { %v98_v34 = vsel %vm59_vm2, %v96_v33, 0.0  ;;  %v117_v39 = vrot.slane %v116_v37, 4 }
 0x1d2   :  { %99 = vadd.xlane.f32.xlu1 %v98_v34  ;;  %v111_v43 = vadd.f32 %v110_v40, %v109_v38 }
 0x1d3   :  { %v118_v42 = vadd.f32 %v117_v39, %v116_v37 }
 0x1d4   :  { %v112_v45 = vrot.slane %v111_v43, 2 }
 0x1d5   :  { %v119_v44 = vrot.slane %v118_v42, 2 }
 0x1d6   :  { %v113_v48 = vadd.f32 %v112_v45, %v111_v43 }
 0x1d7   :  { %v120_v46 = vadd.f32 %v119_v44, %v118_v42 }
 0x1d8   :  { %v114_v52 = vrot.slane %v113_v48, 1 }
 0x1d9   :  { %v121_v50 = vrot.slane %v120_v46, 1 }
 0x1da   :  { %v115_v56 = vadd.f32 %v114_v52, %v113_v48 }
 0x1db   :  { %v122_v54 = vadd.f32 %v121_v50, %v120_v46 }
 0x25f   :  { %v100_v41 = vpop.xlane.xlu1 %99 }
 0x260   :  { %163 = vrcp.f32 %v100_v41 }
 0x26a   :  { %v164_v47 = vpop.eup %163 }
 0x26b   :  { %v102_v49 = vmul.f32 %v164_v47, %v100_v41 }
 0x26d   :  { %v103_v51 = vsub.f32 2.0, %v102_v49 }
 0x26f   :  { %v104_v53 = vmul.f32 %v164_v47, %v103_v51 }
 0x271   :  { %v124_v55 = vrot.slane %v104_v53, 1  ;;  %v127_v58 = vmul.f32 %v115_v56, %v104_v53 }
 0x273   :  { %v128_v57 = vmul.f32 %v124_v55, %v122_v54 }
 0x275   :  { %v131_v59 = vrot.slane %v128_v57, 7 }
 0x277   :  { %v132_v60 = vsel %vm56_vm1, %v131_v59, %v127_v58 }
 0x278   :  { %135 = vst.msk [vmem:[#allocation5] sm:$0x3] %vm134_vm3, %v132_v60 }
 0x279   :  { %198 = shalt.err (!%p195_p12)
}
 0x27a   :  { %s199_s28 = scalar_lea.hbm %s271_s2, 32 }
 0x27b   :  { %p200_p13 = scmp.ne.s32.totalorder %s271_s2, %s199_s28  ;;  %p203_p0 = scmp.lt.u32.totalorder %s199_s28, %s271_s2 }
 0x27d   :  { %p205_p1 = pnand %p203_p0, %p200_p13 }
 0x27f   :  { %208 = shalt.err (!%p205_p1)
}
 0x280   :  { %145 = dma.vmem_to_hbm [thread:$0]  %s143_s1, 32, %s271_s2, [#allocation4]  }
 0x281   :  { %211 = dma.done.wait [#allocation4], 32  }
 0x282   :  { %212 = vsyncadd [#allocation4], 4294967264 }
 0x283   :  { %149 = vsyncpa [#allocation3], 1 }
 0x284   :  { %150 = vsyncpa [#allocation4], 1 }

</bundles_post_ra>
